<compile_context>
chip_gen: v7x
topology: tpu7x:2x2x1
jax: 0.10.0
libtpu: 0.0.40
codegen_flags: <defaults>
</compile_context>

<pallas_src>
import math
from functools import partial

import jax
import jax.numpy as jnp
import numpy as np
from jax.experimental import pallas as pl
from jax.experimental.pallas import tpu as pltpu

# ---------------------------------------------------------------------------
# The symbolic expression implemented by the kernels (documented, fixed).
# TODO(synk): the PyTorch module eval()s an arbitrary expression string; the
# kernels hard-code this reviewed expression — regenerate the kernel body if
# `expr` changes.
# ---------------------------------------------------------------------------
EXPR_STR = "ad * ld + sg * cd + 0.01 * exp(-g2) * sin(g)"

_LANE = 128          # elements per lane-row in the packed layout
_SUBLANE = 8         # sublane granularity for f32 tiles
_VMEM_LIMIT = 32 * 1024 * 1024   # safe on v5e (128 MiB phys), v6e, v7x (64 MiB phys)

# Feature columns read by the expression: g, g2, sg, ad, ld, cd.
_FEATURE_COLS = (2, 3, 6, 8, 10, 11)


def _round_up(x, m):
    return ((x + m - 1) // m) * m


def _num_tensorcores():
    """Heuristic TC count per chip: 2 on v7x, 1 on v5e/v6e."""
    try:
        kind = jax.devices()[0].device_kind.lower()
    except Exception:
        return 1
    return 2 if "7" in kind else 1


def _pick_tiling(nr, cap):
    """Pick (grid_steps, tile_rows, padded_rows) with tile_rows * steps == padded_rows.

    Padding overhead is at most ~8 rows per grid step (<~0.5% for large N), and
    blocks always divide the padded extent exactly (no ragged-block reliance).
    """
    steps = max(1, pl.cdiv(nr, cap))
    if steps == 1 and _num_tensorcores() >= 2 and nr >= 32:
        steps = 2                                # give both v7x TensorCores a block
    if steps == 1:
        tile = nr                                # full extent (legal for any size)
    else:
        tile = _round_up(pl.cdiv(nr, steps), _SUBLANE)
    return steps, tile, tile * steps


def _sign(x):
    """jnp.sign spelled with selects (guaranteed Mosaic lowering; sign(0)=0)."""
    one = jnp.ones_like(x)
    return jnp.where(x > 0, one, jnp.where(x < 0, -one, jnp.zeros_like(x)))


# ---------------------------------------------------------------------------
# Kernel 1: forward() — elementwise expression over lane-dense feature slabs.
# ---------------------------------------------------------------------------
def expr_forward_kernel(feat_ref, out_ref):
    # feat_ref: (6, TR, 128) f32 tile in VMEM; feature order: g, g2, sg, ad, ld, cd
    # out_ref : (TR, 128)    f32 tile in VMEM (lane-dense, unmasked stores)
    g = feat_ref[0]
    g2 = feat_ref[1]
    sg = feat_ref[2]
    ad = feat_ref[3]
    ld = feat_ref[4]
    cd = feat_ref[5]

    # updates = eval(self.expr)  --> fixed expression EXPR_STR
    updates = ad * ld + sg * cd + 0.01 * jnp.exp(-g2) * jnp.sin(g)
    out_ref[...] = updates.astype(out_ref.dtype)


@partial(jax.jit, static_argnames=("max_tile_rows",))
def expr_attack_forward(inputs, *, max_tile_rows=2048):
    """forward() semantics: inputs (N, 14) f32 -> updates (N, 1) f32."""
    n, f = inputs.shape
    assert f >= 12, "forward() expects the 14-column feature matrix"

    nr = max(1, pl.cdiv(n, _LANE))
    steps, tile, nr_pad = _pick_tiling(nr, max_tile_rows)
    n_pad = nr_pad * _LANE

    # Single fused XLA pass: 6-column gather + transpose (+ tiny pad) feeding
    # the kernel a lane-dense (6, NR, 128) slab.
    # TODO(synk): when the caller is build_fea/meta_update, use
    # expr_attack_meta_update below instead and skip this pass entirely.
    feats = jnp.stack([inputs[:, c] for c in _FEATURE_COLS], axis=0)
    feats = feats.astype(jnp.float32)                        # (6, N)
    if n_pad != n:
        feats = jnp.pad(feats, ((0, 0), (0, n_pad - n)))
    feats3 = feats.reshape(6, nr_pad, _LANE)                 # (6, NR, 128)

    out2d = pl.pallas_call(
        expr_forward_kernel,
        out_shape=jax.ShapeDtypeStruct((nr_pad, _LANE), jnp.float32),
        grid_spec=pltpu.PrefetchScalarGridSpec(
            num_scalar_prefetch=0,
            grid=(steps,),
            in_specs=[pl.BlockSpec((6, tile, _LANE), lambda i: (0, i, 0))],
            out_specs=pl.BlockSpec((tile, _LANE), lambda i: (i, 0)),
        ),
        compiler_params=pltpu.CompilerParams(
            dimension_semantics=("parallel",),
            vmem_limit_bytes=_VMEM_LIMIT,
        ),
    )(feats3)

    out_flat = out2d.reshape(-1)
    if n_pad != n:
        out_flat = out_flat[:n]          # copies only on the padded path
    return out_flat[:, None]             # (N, 1)


# ---------------------------------------------------------------------------
# Kernel 2: fused meta_update — build_fea + forward folded into one kernel.
# Inputs are naturally lane-dense (g / mt / vt slabs), so no packing pass and
# only ~24 B/elem of HBM traffic (read g, mt, vt; write updates, mt', vt').
# ---------------------------------------------------------------------------
def meta_update_kernel(scal_ref, g_ref, mt_ref, vt_ref,
                       upd_ref, mt_out_ref, vt_out_ref):
    # scal_ref (SMEM, f32[6]): beta1, beta2, 1/(1-b1^t), 1/(1-b2^t), ld, cd
    b1 = scal_ref[0]
    b2 = scal_ref[1]
    c1 = scal_ref[2]
    c2 = scal_ref[3]
    ld = scal_ref[4]
    cd = scal_ref[5]

    g = g_ref[...]
    g2 = g * g
    mt_new = b1 * mt_ref[...] + (1.0 - b1) * g
    vt_new = b2 * vt_ref[...] + (1.0 - b2) * g2
    m = mt_new * c1
    v = jnp.sqrt(vt_new * c2) + 1e-12
    ad = m / v
    sg = _sign(g)

    # TODO(synk): if callers tolerate bf16 updates, halving the writeback here
    # keeps this fused kernel memory-bound even on v7x (sin() is VALU-heavy).
    upd_ref[...] = ad * ld + sg * cd + 0.01 * jnp.exp(-g2) * jnp.sin(g)
    mt_out_ref[...] = mt_new
    vt_out_ref[...] = vt_new


def _pad_flat(x, n_pad):
    n = x.shape[0]
    return x if n == n_pad else jnp.pad(x, (0, n_pad - n))


@partial(jax.jit, static_argnames=("T", "beta1", "beta2", "max_tile_rows"))
def expr_attack_meta_update(grads, mt, vt, step, T,
                            beta1=0.9, beta2=0.999, *, max_tile_rows=2048):
    """Fused build_fea + forward: (grads, mt, vt) -> (updates, mt', vt')."""
    shape = grads.shape
    g = grads.reshape(-1).astype(jnp.float32)
    mt_f = mt.reshape(-1).astype(jnp.float32)
    vt_f = vt.reshape(-1).astype(jnp.float32)
    n = g.shape[0]

    nr = max(1, pl.cdiv(n, _LANE))
    steps, tile, nr_pad = _pick_tiling(nr, max_tile_rows)
    n_pad = nr_pad * _LANE

    g2d = _pad_flat(g, n_pad).reshape(nr_pad, _LANE)
    mt2d = _pad_flat(mt_f, n_pad).reshape(nr_pad, _LANE)
    vt2d = _pad_flat(vt_f, n_pad).reshape(nr_pad, _LANE)

    # Per-step scalars ride in SMEM via scalar prefetch.
    step_f = jnp.asarray(step, jnp.float32)
    c1 = 1.0 / (1.0 - beta1 ** step_f)
    c2 = 1.0 / (1.0 - beta2 ** step_f)
    ld = 1.0 - step_f / T
    cd = 0.5 * (1.0 + jnp.cos(3.14 * (step_f / T)))   # 3.14 literal: faithful to the torch model
    scalars = jnp.stack(
        [jnp.float32(beta1), jnp.float32(beta2), c1, c2, ld, cd]
    ).astype(jnp.float32)

    blk = pl.BlockSpec((tile, _LANE), lambda i, s: (i, 0))
    upd2d, mt_new2d, vt_new2d = pl.pallas_call(
        meta_update_kernel,
        out_shape=(jax.ShapeDtypeStruct((nr_pad, _LANE), jnp.float32),) * 3,
        grid_spec=pltpu.PrefetchScalarGridSpec(
            num_scalar_prefetch=1,
            grid=(steps,),
            in_specs=[blk, blk, blk],
            out_specs=[blk, blk, blk],
        ),
        compiler_params=pltpu.CompilerParams(
            dimension_semantics=("parallel",),
            vmem_limit_bytes=_VMEM_LIMIT,
        ),
    )(scalars, g2d, mt2d, vt2d)

    def unpad(x2d):
        x = x2d.reshape(-1)
        return x[:n] if n_pad != n else x

    updates = unpad(upd2d).reshape(shape)
    mt_new = unpad(mt_new2d).reshape(mt.shape)
    vt_new = unpad(vt_new2d).reshape(vt.shape)
    return updates, mt_new, vt_new


# ---------------------------------------------------------------------------
# Plain-JAX glue: replicate preprocess_gradients / build_fea / meta_update's
# feature construction so the forward kernel sees realistic (N, 14) inputs.
# ---------------------------------------------------------------------------
def preprocess_gradients(x):
    p = 10.0
    eps = 1e-06
    indicator = (jnp.abs(x) > math.exp(-p)).astype(jnp.float32)
    x1 = jnp.log(jnp.abs(x) + eps) / p * indicator - (1.0 - indicator)
    x2 = jnp.sign(x) * indicator + math.exp(p) * x * (1.0 - indicator)
    return jnp.concatenate((x1, x2), axis=1)


def build_inputs(grads, step, T, beta1=0.9, beta2=0.999):
    """grads: arbitrary-shaped float32 -> (N, 14) feature matrix (zero state)."""
    g = grads.reshape(-1)[:, None].astype(jnp.float32)       # (N, 1)
    n = g.shape[0]
    mt = jnp.zeros_like(g)
    vt = jnp.zeros_like(g)

    g2 = g ** 2
    g3 = g ** 3
    ag = preprocess_gradients(g)[:, 0:1]
    mt = beta1 * mt + (1.0 - beta1) * g
    m = mt / (1.0 - beta1 ** step)
    vt = beta2 * vt + (1.0 - beta2) * g2
    vt_hat = vt / (1.0 - beta2 ** step)
    v = jnp.sqrt(vt_hat) + 1e-12
    sg = jnp.sign(g)
    sm = jnp.sign(m)
    ad = m / v
    rs = g / v
    ld = jnp.full((n, 1), 1.0 - step / T, dtype=jnp.float32)
    # 3.14 (not math.pi) is intentional: faithful to the PyTorch model.
    cd = jnp.full((n, 1), 0.5 * (1.0 + jnp.cos(3.14 * (step / T))), dtype=jnp.float32)
    ones = jnp.full((n, 1), 1.0, dtype=jnp.float32)
    twos = jnp.full((n, 1), 2.0, dtype=jnp.float32)

    feats = [m, v, g, g2, g3, ag, sg, sm, ad, rs, ld, cd, ones, twos]
    return jnp.concatenate(feats, axis=1)                    # (N, 14)


def reference_forward(inputs):
    """Pure-JAX reference of forward() for correctness checking."""
    g = inputs[:, 2]
    g2 = inputs[:, 3]
    sg = inputs[:, 6]
    ad = inputs[:, 8]
    ld = inputs[:, 10]
    cd = inputs[:, 11]
    updates = ad * ld + sg * cd + 0.01 * jnp.exp(-g2) * jnp.sin(g)
    return updates[:, None]


if __name__ == "__main__":
    key = jax.random.PRNGKey(0)
    k1, k2, k3 = jax.random.split(key, 3)
    step, T = 3, 10

    # --- forward() path: (N, 14) -> (N, 1) ---------------------------------
    # Case 1: N = 128 (exact lane multiple; no pad, no output copy).
    grads1 = jax.random.normal(k1, (2, 64), dtype=jnp.float32) * 0.1
    inputs1 = build_inputs(grads1, step, T)                   # (128, 14)
    out1 = jax.block_until_ready(expr_attack_forward(inputs1))
    np.testing.assert_allclose(np.asarray(out1),
                               np.asarray(reference_forward(inputs1)),
                               rtol=1e-5, atol=1e-5)
    assert out1.shape == (128, 1)

    # Case 2: N = 201 (not a multiple of 128 -> small fused pad + output slice).
    grads2 = jax.random.normal(k2, (3, 67), dtype=jnp.float32) * 0.1
    inputs2 = build_inputs(grads2, step, T)                   # (201, 14)
    out2 = jax.block_until_ready(expr_attack_forward(inputs2))
    np.testing.assert_allclose(np.asarray(out2),
                               np.asarray(reference_forward(inputs2)),
                               rtol=1e-5, atol=1e-5)
    assert out2.shape == (201, 1)

    # Case 3: multi-step grid (tiny tile cap forces 3 grid steps, blocks divide exactly).
    grads3 = jax.random.normal(k3, (24, 128), dtype=jnp.float32) * 0.1
    inputs3 = build_inputs(grads3, step, T)                   # (3072, 14)
    out3 = jax.block_until_ready(expr_attack_forward(inputs3, max_tile_rows=8))
    np.testing.assert_allclose(np.asarray(out3),
                               np.asarray(reference_forward(inputs3)),
                               rtol=1e-5, atol=1e-5)
    assert out3.shape == (3072, 1)

    # --- fused meta_update path (build_fea folded into the kernel) ----------
    mt0 = jnp.zeros_like(grads1)
    vt0 = jnp.zeros_like(grads1)
    upd, mt1, vt1 = jax.block_until_ready(
        expr_attack_meta_update(grads1, mt0, vt0, step, T))
    np.testing.assert_allclose(
        np.asarray(upd),
        np.asarray(reference_forward(inputs1)).reshape(grads1.shape),
        rtol=1e-5, atol=1e-5)
    g1 = np.asarray(grads1, np.float32)
    np.testing.assert_allclose(np.asarray(mt1), (1.0 - np.float32(0.9)) * g1,
                               rtol=1e-5, atol=1e-10)
    np.testing.assert_allclose(np.asarray(vt1), (1.0 - np.float32(0.999)) * g1 * g1,
                               rtol=1e-4, atol=1e-12)

    print("KERNEL_OK")
</pallas_src>

<mosaic_0001>
module attributes {stable_mosaic.version = 11 : i64} {
  func.func @expr_forward_kernel(%arg0: i32, %arg1: memref<6x1x128xf32, #tpu.memory_space<vmem>>, %arg2: memref<1x128xf32, #tpu.memory_space<vmem>>) attributes {dimension_semantics = [#tpu.dimension_semantics<parallel>], iteration_bounds = array<i64: 1>, scalar_prefetch = 0 : i64, scratch_operands = 0 : i64, tpu.core_type = #tpu.core_type<tc>, window_params = [{transform_indices = @transform_0, window_bounds = array<i64: 6, 1, 128>}, {transform_indices = @transform_1, window_bounds = array<i64: 1, 128>}]} {
    %c0 = arith.constant 0 : index
    %c0_0 = arith.constant 0 : index
    %c0_1 = arith.constant 0 : index
    %0 = vector.load %arg1[%c0, %c0_0, %c0_1] : memref<6x1x128xf32, #tpu.memory_space<vmem>>, vector<1x1x128xf32>
    %1 = vector.shape_cast %0 : vector<1x1x128xf32> to vector<1x128xf32>
    %c1 = arith.constant 1 : index
    %c0_2 = arith.constant 0 : index
    %c0_3 = arith.constant 0 : index
    %2 = vector.load %arg1[%c1, %c0_2, %c0_3] : memref<6x1x128xf32, #tpu.memory_space<vmem>>, vector<1x1x128xf32>
    %3 = vector.shape_cast %2 : vector<1x1x128xf32> to vector<1x128xf32>
    %c2 = arith.constant 2 : index
    %c0_4 = arith.constant 0 : index
    %c0_5 = arith.constant 0 : index
    %4 = vector.load %arg1[%c2, %c0_4, %c0_5] : memref<6x1x128xf32, #tpu.memory_space<vmem>>, vector<1x1x128xf32>
    %5 = vector.shape_cast %4 : vector<1x1x128xf32> to vector<1x128xf32>
    %c3 = arith.constant 3 : index
    %c0_6 = arith.constant 0 : index
    %c0_7 = arith.constant 0 : index
    %6 = vector.load %arg1[%c3, %c0_6, %c0_7] : memref<6x1x128xf32, #tpu.memory_space<vmem>>, vector<1x1x128xf32>
    %7 = vector.shape_cast %6 : vector<1x1x128xf32> to vector<1x128xf32>
    %c4 = arith.constant 4 : index
    %c0_8 = arith.constant 0 : index
    %c0_9 = arith.constant 0 : index
    %8 = vector.load %arg1[%c4, %c0_8, %c0_9] : memref<6x1x128xf32, #tpu.memory_space<vmem>>, vector<1x1x128xf32>
    %9 = vector.shape_cast %8 : vector<1x1x128xf32> to vector<1x128xf32>
    %c5 = arith.constant 5 : index
    %c0_10 = arith.constant 0 : index
    %c0_11 = arith.constant 0 : index
    %10 = vector.load %arg1[%c5, %c0_10, %c0_11] : memref<6x1x128xf32, #tpu.memory_space<vmem>>, vector<1x1x128xf32>
    %11 = vector.shape_cast %10 : vector<1x1x128xf32> to vector<1x128xf32>
    %12 = arith.mulf %7, %9 : vector<1x128xf32>
    %13 = arith.mulf %5, %11 : vector<1x128xf32>
    %14 = arith.addf %12, %13 : vector<1x128xf32>
    %cst = arith.constant 0.000000e+00 : f32
    %15 = vector.broadcast %cst : f32 to vector<1x128xf32>
    %16 = arith.subf %15, %3 : vector<1x128xf32>
    %17 = math.exp %16 : vector<1x128xf32>
    %cst_12 = arith.constant 0.00999999977 : f32
    %18 = vector.broadcast %cst_12 : f32 to vector<1x128xf32>
    %19 = arith.mulf %18, %17 : vector<1x128xf32>
    %20 = math.sin %1 : vector<1x128xf32>
    %21 = arith.mulf %19, %20 : vector<1x128xf32>
    %22 = arith.addf %14, %21 : vector<1x128xf32>
    %c0_13 = arith.constant 0 : index
    %c0_14 = arith.constant 0 : index
    %23 = vector.load %arg2[%c0_13, %c0_14] : memref<1x128xf32, #tpu.memory_space<vmem>>, vector<1x128xf32>
    tpu.vector_store %arg2[%c0_13, %c0_14], %22 {strides = array<i32>} : memref<1x128xf32, #tpu.memory_space<vmem>>, vector<1x128xf32>,
    return
  }
  func.func @transform_0(%arg0: i32) -> (i32, i32, i32) {
    %c0_i32 = arith.constant 0 : i32
    %c0_i32_0 = arith.constant 0 : i32
    %c0_i32_1 = arith.constant 0 : i32
    return %c0_i32, %arg0, %c0_i32_0 : i32, i32, i32
  }
  func.func @transform_1(%arg0: i32) -> (i32, i32) {
    %c0_i32 = arith.constant 0 : i32
    %c0_i32_0 = arith.constant 0 : i32
    return %arg0, %c0_i32 : i32, i32
  }
}

</mosaic_0001>

<bundles_post_ra>
// kernel: expr_attack_forward.1
= control target key start
LH: loop header
LB: loop body
LE: loop exit
PB: predicated region body
PF: predicated region fallthrough
CT: control target
= control target key end

     0   :  { %s266_s0 = inlined_call_operand.vmem [shape: f32[6,1,128], index: 0, kind: input, shape index: {}]   ;;  %s267_s1 = inlined_call_operand.hbm [shape: f32[1,128], index: 1, kind: output, shape index: {}]  }
   0x1   :  { %v218_v0 = vld [vmem:[%s266_s0] sm:$0x1] }
   0x2   :  { %6 = vsyncpa [#allocation3], 0  ;;  %v30_v1 = vand.u32 2139095040, %v218_v0  ;;  %v27_v4 = vand.u32 2147483647, %v218_v0  ;;  %vm29_vm7 = vcmp.lt.s32.totalorder %v218_v0, 0  ;;  %vm119_vm12 = vweird.f32 %v218_v0 }
   0x3   :  { %v198_v11 = vmov 683565275   ;;  %v199_v13 = vmov 2475754826   ;;  %v200_v15 = vmov 2131351028  }
   0x4   :  { %v31_v2 = vshrl.u32 %v30_v1, 23  ;;  %v34_v6 = vand.u32 8388607, %v27_v4  ;;  %v201_v17 = vmov 2102212464   ;;  %s204_s18 = smov [#allocation2]  }
   0x5   :  { %v202_v19 = vmov 920167782   ;;  %v203_v27 = vmov 1326507024   ;;  %vm28_vm8 = vcmp.le.f32.partialorder %v27_v4, 0.7853982 }
   0x6   :  { %v153_v3 = vadd.s32 4294967169, %v31_v2  ;;  %v35_v21 = vor.u32 8388608, %v34_v6  ;;  %v151_v4 = vld [vmem:[%s266_s0 + $0x4] sm:$0x1] }
   0x8   :  { %v37_v5 = vadd.s32 1, %v153_v3  ;;  %v75_v36 = vshll.u32 %v35_v21, 8 }
   0xa   :  { %vm38_vm0 = vcmp.gt.s32.totalorder %v37_v5, 0 }
   0xb   :  { %v39_v7 = vsel %vm38_vm0, %v37_v5, 0 }
   0xc   :  { %v41_v8 = vand.u32 31, %v39_v7  ;;  %v40_v9 = vshrl.u32 %v39_v7, 5 }
   0xe   :  { %v42_v10 = vsub.s32 32, %v41_v8  ;;  %v44_v12 = vshll.u32 %v198_v11, %v41_v8  ;;  %v47_v14 = vshll.u32 %v199_v13, %v41_v8  ;;  %v50_v16 = vshll.u32 %v200_v15, %v41_v8 }
   0xf   :  { %v53_v18 = vshll.u32 %v201_v17, %v41_v8  ;;  %v56_v20 = vshll.u32 %v202_v19, %v41_v8  ;;  %vm59_vm1 = vcmp.lt.s32.totalorder %v40_v9, 1  ;;  %vm62_vm2 = vcmp.lt.s32.totalorder %v40_v9, 4  ;;  %v148_v8 = vld [vmem:[%s266_s0 + $0x1] sm:$0x1] }
  0x10   :  { %v43_v22 = vshrl.u32 %v198_v11, %v42_v10  ;;  %v45_v23 = vshrl.u32 %v199_v13, %v42_v10  ;;  %v48_v24 = vshrl.u32 %v200_v15, %v42_v10  ;;  %v51_v25 = vshrl.u32 %v201_v17, %v42_v10 }
  0x11   :  { %v54_v26 = vshrl.u32 %v202_v19, %v42_v10  ;;  %v57_v28 = vshrl.u32 %v203_v27, %v42_v10  ;;  %vm61_vm3 = vcmp.lt.s32.totalorder %v40_v9, 3  ;;  %vm60_vm4 = vcmp.lt.s32.totalorder %v40_v9, 2  ;;  %v152_v27 = vld [vmem:[%s266_s0 + $0x5] sm:$0x1] }
  0x12   :  { %v46_v29 = vor.u32 %v45_v23, %v44_v12  ;;  %v49_v30 = vor.u32 %v48_v24, %v47_v14  ;;  %v52_v31 = vor.u32 %v51_v25, %v50_v16  ;;  %v23_v13 = vsub.f32 0.0, %v148_v8  ;;  %v149_v25 = vld [vmem:[%s266_s0 + $0x2] sm:$0x1] }
  0x13   :  { %v55_v32 = vor.u32 %v54_v26, %v53_v18  ;;  %v58_v33 = vor.u32 %v57_v28, %v56_v20  ;;  %v150_v26 = vld [vmem:[%s266_s0 + $0x3] sm:$0x1]  ;;  %s140_s0 = sshll.u32 %s204_s18, 4  ;;  %s141_s0 = int_to_ptr.vmem [resolvable:$true] %s140_s0 }
  0x14   :  { %v63_v34 = vsel %vm59_vm1, %v43_v22, %v46_v29  ;;  %v67_v35 = vsel %vm59_vm1, %v46_v29, %v49_v30  ;;  %v64_v37 = vsel %vm62_vm2, %v52_v31, 2102212464  ;;  %v71_v39 = vsel %vm59_vm1, %v49_v30, %v52_v31  ;;  %s174_s19 = scalar_lea.vmem %s141_s0, 16  ;;  %s178_s20 = scalar_lea.vmem %s141_s0, 32 }
  0x15   :  { %v68_v38 = vsel %vm62_vm2, %v55_v32, 920167782  ;;  %v72_v40 = vsel %vm62_vm2, %v58_v33, 1326507024  ;;  %v65_v41 = vsel %vm61_vm3, %v49_v30, %v64_v37  ;;  %v24_v17 = vmul.f32 1.442695, %v23_v13  ;;  %p175_p0 = scmp.ne.s32.totalorder %s141_s0, %s174_s19  ;;  %p179_p1 = scmp.lt.s32.totalorder %s141_s0, %s141_s0 }
  0x16   :  { %v69_v42 = vsel %vm61_vm3, %v52_v31, %v68_v38  ;;  %v73_v43 = vsel %vm61_vm3, %v55_v32, %v72_v40  ;;  %v66_v44 = vsel %vm60_vm4, %v63_v34, %v65_v41  ;;  %v20_v31 = vmul.f32 %v151_v4, %v150_v26  ;;  %p180_p2 = scmp.lt.s32.totalorder %s178_s20, %s174_s19 }
  0x17   :  { %v70_v45 = vsel %vm60_vm4, %v67_v35, %v69_v42  ;;  %v74_v46 = vsel %vm60_vm4, %v71_v39, %v73_v43  ;;  %v82_v51 = vmul.u32 %v75_v36, %v66_v44  ;;  %168 = vpow2.f32 %v24_v17 }
  0x18   :  { %v224_v47 = vmul.u32.u64.low %v75_v36, %v74_v46  ;;  %v225_v48 = vmul.u32.u64.high %v75_v36, %v74_v46, %v224_v47  ;;  %v227_v49 = vmul.u32.u64.low %v75_v36, %v70_v45  ;;  %v228_v50 = vmul.u32.u64.high %v75_v36, %v70_v45, %v227_v49  ;;  %p181_p3 = por %p180_p2, %p179_p1 }
  0x19   :  { %v21_v32 = vmul.f32 %v152_v27, %v149_v25 }
  0x1a   :  { %vm84_vm5 = vc.u32 %v225_v48, %v227_v49  ;;  %v85_v52 = vadd.s32 1, %v228_v50  ;;  %v83_v63 = vadd.s32 %v227_v49, %v225_v48  ;;  %p182_p4 = pnand %p181_p3, %p175_p0 }
  0x1b   :  { %v22_v38 = vadd.f32 %v21_v32, %v20_v31 }
  0x1c   :  { %v86_v53 = vsel %vm84_vm5, %v85_v52, %v228_v50 }
  0x1d   :  { %v87_v54 = vadd.s32 %v86_v53, %v82_v51 }
  0x1f   :  { %v88_v55 = vadd.s32 536870912, %v87_v54 }
  0x21   :  { %v89_v56 = vshrl.u32 %v88_v55, 30  ;;  %v169_v28 = vpop.eup %168 }
  0x22   :  { %v26_v35 = vmul.f32 0.01, %v169_v28 }
  0x23   :  { %v90_v57 = vshll.u32 %v89_v56, 30  ;;  %v113_v15 = vsub.s32 4, %v89_v56 }
  0x25   :  { %v91_v58 = vsub.s32 %v87_v54, %v90_v57  ;;  %v114_v19 = vsel %vm29_vm7, %v113_v15, %v89_v56 }
  0x26   :  { %v116_v22 = vsel %vm28_vm8, 0, %v114_v19 }
  0x27   :  { %v93_v59 = vsub.s32 0, %v91_v58  ;;  %v120_v23 = vadd.s32 3, %v116_v22 }
  0x29   :  { %v154_v60 = vmin.u32 %v93_v59, %v91_v58  ;;  %v121_v24 = vand.u32 3, %v120_v23 }
  0x2b   :  { %v95_v61 = vclz %v154_v60  ;;  %vm126_vm9 = vcmp.eq.s32.totalorder %v121_v24, 2  ;;  %vm123_vm10 = vcmp.eq.s32.totalorder %v121_v24, 0  ;;  %vm122_vm11 = vcmp.lt.s32.totalorder %v121_v24, 2 }
  0x2d   :  { %v155_v62 = vadd.s32 4294967294, %v95_v61 }
  0x2f   :  { %vm156_vm6 = vcmp.lt.s32.totalorder %v155_v62, 0 }
  0x30   :  { %v98_v1 = vsel %vm156_vm6, 0, %v155_v62 }
  0x31   :  { %v99_v2 = vsub.s32 32, %v98_v1  ;;  %v100_v3 = vshll.u32 %v91_v58, %v98_v1  ;;  %v103_v5 = vsub.s32 4294967266, %v98_v1 }
  0x33   :  { %v101_v6 = vshrl.u32 %v83_v63, %v99_v2  ;;  %v104_v7 = vadd.s32 127, %v103_v5 }
  0x35   :  { %v102_v9 = vor.u32 %v101_v6, %v100_v3  ;;  %v105_v10 = vshll.u32 %v104_v7, 23 }
  0x37   :  { %v106_v11 = vor.u32 4788187, %v105_v10  ;;  %v109_v12 = vcvt.s32.f32 %v102_v9 }
  0x39   :  { %v107_v14 = vand.u32 2147483647, %v106_v11 }
  0x3b   :  { %v110_v16 = vmul.f32 %v109_v12, %v107_v14 }
  0x3d   :  { %v111_v18 = vxor.u32 2147483648, %v110_v16 }
  0x3f   :  { %v112_v20 = vsel %vm29_vm7, %v111_v18, %v110_v16 }
  0x40   :  { %v115_v21 = vsel %vm28_vm8, %v218_v0, %v112_v20 }
  0x41   :  { %170 = vcosq.f32 %v115_v21 }
  0x42   :  { %172 = vsinq.f32 %v115_v21 }
  0x4b   :  { %v171_v29 = vpop.eup %170 }
  0x4c   :  { %v173_v30 = vpop.eup %172  ;;  %v127_v33 = vxor.u32 2147483648, %v171_v29 }
  0x4d   :  { %v124_v34 = vxor.u32 2147483648, %v173_v30 }
  0x4e   :  { %v128_v36 = vsel %vm126_vm9, %v127_v33, %v173_v30 }
  0x4f   :  { %v125_v37 = vsel %vm123_vm10, %v171_v29, %v124_v34 }
  0x50   :  { %v129_v39 = vsel %vm122_vm11, %v125_v37, %v128_v36 }
  0x51   :  { %v130_v40 = vsel %vm119_vm12, nan, %v129_v39 }
  0x52   :  { %v131_v41 = vmul.f32 %v130_v40, %v26_v35 }
  0x54   :  { %v132_v42 = vadd.f32 %v131_v41, %v22_v38 }
  0x56   :  { %133 = vst [vmem:[#allocation2] sm:$0x1] %v132_v42 }
  0x57   :  { %185 = shalt.err (!%p182_p4)
}
  0x58   :  { %s186_s23 = scalar_lea.hbm %s267_s1, 16 }
  0x59   :  { %p187_p5 = scmp.ne.s32.totalorder %s267_s1, %s186_s23  ;;  %p190_p6 = scmp.lt.u32.totalorder %s186_s23, %s267_s1 }
  0x5b   :  { %p192_p7 = pnand %p190_p6, %p187_p5 }
  0x5d   :  { %195 = shalt.err (!%p192_p7)
}
  0x5e   :  { %143 = dma.vmem_to_hbm [thread:$0]  %s141_s0, 16, %s267_s1, [#allocation3]  }
  0x5f   :  { %196 = dma.done.wait [#allocation3], 16  }
  0x60   :  { %197 = vsyncadd [#allocation3], 4294967280 }
  0x61   :  { %147 = vsyncpa [#allocation3], 1 }

</bundles_post_ra>
